<compile_context>
chip_gen: v5e
topology: v5e:2x2
jax: 0.10.0
libtpu: 0.0.40
codegen_flags: <defaults>
</compile_context>

<pallas_src>
import re
import jax
import jax.numpy as jnp
from jax.experimental import pallas as pl
from jax.experimental.pallas import tpu as pltpu

N_HIDDEN = 32
KEYWORDS = {'on', 'in', 'to', 'into', 'from'}
_LANE = 128
_VMEM_LIMIT = 32 * 1024 * 1024        # scoped-VMEM cap (safe on v7x's 32 MiB default)
_PIPE_VMEM_BUDGET = 20 * 1024 * 1024  # budget for double-buffered pipeline tiles
_MAX_TILE_PX = 1 << 16                # 65536 px per tile upper cap


def _round_up(x, m):
    return ((x + m - 1) // m) * m


def _cdiv(a, b):
    return -(-a // b)


def _choose_tile_p(p, c_pad, max_tile_px=None):
    """Largest lane-dense pixel tile whose double-buffered pipeline footprint
    (bf16 x tile + f32 sim + f32 logits) fits the VMEM budget, balanced across
    tiles.  Big tiles amortize the ~0.35us (~600-cycle) per-grid-step cost."""
    max_tile = max_tile_px or _MAX_TILE_PX
    p128 = _round_up(p, _LANE)
    bytes_per_px = 2 * (2 * c_pad + 4 + 4)   # 2 buffers x (bf16 x + f32 sim + f32 out)
    cap = (_PIPE_VMEM_BUDGET // bytes_per_px) // _LANE * _LANE
    cap = max(_LANE, min(max_tile, cap))
    if p128 <= cap:
        return p128                           # single tile covers everything
    n_tiles = _cdiv(p128, cap)
    return _round_up(_cdiv(p128, n_tiles), _LANE)   # balanced tiles (megacore)


# ------------------------------ Pallas kernels ------------------------------ #
def _make_fwd_kernel(dh, tile_p, p_actual, p_pad, with_stats):
    """Two-stream per-pixel MLP + 'add' fusion, pixels on the lane axis.

    x_ref:      (C_pad, TILE_P) bf16  pixels on lanes; channel C is a const-1
                                      bias channel, remaining rows zero pad
    sim_ref:    (1, TILE_P)     f32   conceptfusion similarity
    w_ref:      (2*Dh, C_pad)   bf16  fused [w1|b1 ; w2|b2] weight (one push)
    v_ref:      (8, 2*Dh)       bf16  row0=[v1,0], row1=[0, gamma*v2]
    logits_ref: (1, TILE_P)     f32   lane-dense fused logits
    m_ref/l_ref (with_stats):  (1,128) per-tile partial softmax max / sum-exp
                                       (tile scalar broadcast across lanes)
    """

    def kernel(x_ref, sim_ref, w_ref, v_ref, logits_ref, *stats_refs):
        # one fused MXU push covers both streams (+ biases); accumulate in f32
        h = jnp.dot(w_ref[...], x_ref[...],
                    preferred_element_type=jnp.float32)             # (2Dh, T)

        # stream one: x1, lat = attn_stream_one(x)   (h1 == lat)
        h1 = jnp.maximum(h[:dh, :], 0.0)                             # (Dh, T)
        # stream two (language gate folded into v2 on the host; gate > 0)
        h2 = jnp.maximum(h[dh:, :] + h1, 0.0)                        # (Dh, T)

        # readout contraction on the MXU (replaces VALU muls + sublane reduce)
        hact = jnp.concatenate([h1, h2], axis=0).astype(jnp.bfloat16)
        uv = jnp.dot(v_ref[...], hact,
                     preferred_element_type=jnp.float32)             # (8, T)
        # fusion 'add':  logits = x1 + x2*sim
        logits = uv[0:1, :] + uv[1:2, :] * sim_ref[...]              # (1, T)
        logits_ref[...] = logits

        if with_stats:
            m_ref, l_ref = stats_refs
            if p_pad != p_actual:   # mask padded pixels out of the stats
                i = pl.program_id(0)
                pix = i * tile_p + jax.lax.broadcasted_iota(
                    jnp.int32, (1, tile_p), 1)
                logits_s = jnp.where(pix < p_actual, logits, -jnp.inf)
            else:
                logits_s = logits
            m_tile = jnp.max(logits_s, axis=-1, keepdims=True)       # (1, 1)
            l_tile = jnp.sum(jnp.exp(logits_s - m_tile),
                             axis=-1, keepdims=True)                 # (1, 1)
            # per-tile partial stats, grid stays fully parallel (v7x megacore)
            m_ref[...] = jnp.broadcast_to(m_tile, (1, _LANE))
            l_ref[...] = jnp.broadcast_to(l_tile, (1, _LANE))

    return kernel


def _normalize_kernel(logits_ref, m_ref, l_ref, probs_ref):
    """probs = exp(logits - m) / l, lane-dense, reciprocal on the EUP."""
    inv_l = pl.reciprocal(l_ref[...], approx=True)
    probs_ref[...] = jnp.exp(logits_ref[...] - m_ref[...]) * inv_l


# ------------------------------ pallas_call glue ----------------------------- #
def _fwd_pallas_call(xT, simT, wT, vT, *, p, tile_p, with_stats):
    c_pad, p_pad = xT.shape
    dh2 = wT.shape[0]
    dh = dh2 // 2
    num_tiles = p_pad // tile_p

    kernel = _make_fwd_kernel(dh, tile_p, p, p_pad, with_stats)

    in_specs = [
        pl.BlockSpec((c_pad, tile_p), lambda i: (0, i)),   # x^T (pixels on lanes)
        pl.BlockSpec((1, tile_p), lambda i: (0, i)),       # sim
        pl.BlockSpec((dh2, c_pad), lambda i: (0, 0)),      # fused weight (+bias col)
        pl.BlockSpec((8, dh2), lambda i: (0, 0)),          # readout [v1 ; g*v2]
    ]
    logits_spec = pl.BlockSpec((1, tile_p), lambda i: (0, i))
    logits_shape = jax.ShapeDtypeStruct((1, p_pad), jnp.float32)

    flops = int(2 * p_pad * c_pad * dh2 + 2 * p_pad * dh2 * 8 + 4 * p_pad * dh)
    bytes_accessed = int(xT.size * 2 + simT.size * 4 + wT.size * 2
                         + vT.size * 2 + p_pad * 4)

    if with_stats:
        out_specs = (logits_spec,
                     pl.BlockSpec((1, _LANE), lambda i: (0, i)),
                     pl.BlockSpec((1, _LANE), lambda i: (0, i)))
        out_shape = (logits_shape,
                     jax.ShapeDtypeStruct((1, num_tiles * _LANE), jnp.float32),
                     jax.ShapeDtypeStruct((1, num_tiles * _LANE), jnp.float32))
        transcendentals = int(p_pad)
    else:
        out_specs = logits_spec
        out_shape = logits_shape
        transcendentals = 0

    return pl.pallas_call(
        kernel,
        grid=(num_tiles,),
        in_specs=in_specs,
        out_specs=out_specs,
        out_shape=out_shape,
        compiler_params=pltpu.CompilerParams(
            dimension_semantics=("parallel",),     # tiles shard across TCs (v7x)
            vmem_limit_bytes=_VMEM_LIMIT),
        cost_estimate=pl.CostEstimate(
            flops=flops, transcendentals=transcendentals,
            bytes_accessed=bytes_accessed),
    )(xT, simT, wT, vT)


def _softmax_normalize(logits_pad, m, l, *, tile_p):
    p_pad = logits_pad.shape[1]
    num_tiles = p_pad // tile_p
    return pl.pallas_call(
        _normalize_kernel,
        grid=(num_tiles,),
        in_specs=[pl.BlockSpec((1, tile_p), lambda i: (0, i)),
                  pl.BlockSpec((1, 1), lambda i: (0, 0)),
                  pl.BlockSpec((1, 1), lambda i: (0, 0))],
        out_specs=pl.BlockSpec((1, tile_p), lambda i: (0, i)),
        out_shape=jax.ShapeDtypeStruct((1, p_pad), jnp.float32),
        compiler_params=pltpu.CompilerParams(
            dimension_semantics=("parallel",),
            vmem_limit_bytes=_VMEM_LIMIT),
        cost_estimate=pl.CostEstimate(
            flops=int(2 * p_pad), transcendentals=int(p_pad),
            bytes_accessed=int(2 * p_pad * 4 + 8)),
    )(logits_pad, m, l)


# --------------------------------- host glue -------------------------------- #
def _trim_language(l):
    """Replicates the regex keyword trimming in TwoStreamAttenConceptfusion.attend."""
    sentence = re.sub(r'^\S+\s*', '', l)
    pattern = r'\b(' + '|'.join(sorted(KEYWORDS)) + r')\b'
    match = re.search(pattern, sentence)
    if match:
        return sentence[:match.start()].strip()
    return l


def _embed_language(l, dh):
    """Deterministic synthetic language encoder -> FiLM gate (1, Dh), gate > 0."""
    tokens = l.split() if l else ['<pad>']
    vec = jnp.zeros((dh,), jnp.float32)
    for tok in tokens:
        seed = sum(ord(c) for c in tok) % 9973
        vec = vec + jax.random.normal(jax.random.PRNGKey(seed), (dh,), jnp.float32)
    gamma = 1.0 + 0.1 * jnp.tanh(vec / float(len(tokens)))
    return gamma.reshape(1, dh)


def init_params(key, c, dh):
    ks = jax.random.split(key, 6)
    s = 0.1
    return dict(
        w1=s * jax.random.normal(ks[0], (c, dh), jnp.float32),
        b1=s * jax.random.normal(ks[1], (1, dh), jnp.float32),
        v1=s * jax.random.normal(ks[2], (1, dh), jnp.float32),
        w2=s * jax.random.normal(ks[3], (c, dh), jnp.float32),
        b2=s * jax.random.normal(ks[4], (1, dh), jnp.float32),
        v2=s * jax.random.normal(ks[5], (1, dh), jnp.float32),
    )


def two_stream_atten_conceptfusion_forward(inp_img, lang_goal, sim, params,
                                           softmax=True, max_tile_px=None):
    """Mirrors TwoStreamAttenConceptfusion.forward.

    inp_img: (H, W, C)   -> module reshapes to (1,H,W,C) and permutes to NCHW.
    Returns (H, W, 1) if softmax else (1, H*W), like the PyTorch module.
    """
    H, W, C = inp_img.shape
    P = H * W
    dh = N_HIDDEN

    # TODO(synk): self.preprocess (image normalization) is treated as identity.
    x = jnp.asarray(inp_img, jnp.float32).reshape(P, C)
    sim_row = jnp.asarray(sim, jnp.float32).reshape(1, P)

    # channel layout: [C image channels | constant-1 bias channel | zero pad]
    c_pad = _round_up(C + 1, 16)              # bf16-friendly sublane packing
    tile_p = _choose_tile_p(P, c_pad, max_tile_px)
    num_tiles = _cdiv(_round_up(P, _LANE), tile_p)
    p_pad = num_tiles * tile_p

    # TODO(synk): ideally upstream hands us NCHW / (C, H*W) directly; this
    # transpose + pad + bf16 cast is extra XLA prep traffic before the kernel.
    xT = jnp.concatenate([x.T, jnp.ones((1, P), jnp.float32)], axis=0)
    xT = jnp.pad(xT, ((0, c_pad - (C + 1)), (0, p_pad - P))).astype(jnp.bfloat16)
    simT = jnp.pad(sim_row, ((0, 0), (0, p_pad - P)))

    # fused [stream-one | stream-two] weight with biases folded into the
    # constant-1 channel column -> one MXU push, no bias adds in-kernel.
    w_fused = jnp.concatenate([params['w1'], params['w2']], axis=1)      # (C, 2Dh)
    b_fused = jnp.concatenate([params['b1'], params['b2']], axis=1)      # (1, 2Dh)
    wT = jnp.pad(jnp.concatenate([w_fused, b_fused], axis=0).T,
                 ((0, 0), (0, c_pad - (C + 1)))).astype(jnp.bfloat16)    # (2Dh, Cp)

    # language FiLM gate (strictly > 0) folded into the stream-two readout:
    # relu(z*g) == g*relu(z), so h2*v2 == relu(pre2)*(g*v2)
    gamma = _embed_language(_trim_language(lang_goal), dh)               # (1, Dh)
    v_mat = jnp.zeros((8, 2 * dh), jnp.float32)
    v_mat = v_mat.at[0, :dh].set(params['v1'].reshape(dh))
    v_mat = v_mat.at[1, dh:].set((gamma * params['v2']).reshape(dh))
    vT = v_mat.astype(jnp.bfloat16)

    if softmax:
        logits_pad, m_full, l_full = _fwd_pallas_call(
            xT, simT, wT, vT, p=P, tile_p=tile_p, with_stats=True)
        # combine the per-tile partial softmax stats in XLA (num_tiles is tiny)
        m_tiles = m_full.reshape(num_tiles, _LANE)[:, 0]
        l_tiles = l_full.reshape(num_tiles, _LANE)[:, 0]
        m = jnp.max(m_tiles)
        l = jnp.sum(l_tiles * jnp.exp(m_tiles - m))
        probs_pad = _softmax_normalize(logits_pad, m.reshape(1, 1),
                                       l.reshape(1, 1), tile_p=tile_p)
        return probs_pad[0, :P].reshape(H, W, 1)

    logits_pad = _fwd_pallas_call(xT, simT, wT, vT,
                                  p=P, tile_p=tile_p, with_stats=False)
    return logits_pad[:, :P]


# ------------------------------ pure-JAX reference --------------------------- #
def _reference_forward(inp_img, lang_goal, sim, params, softmax=True):
    H, W, C = inp_img.shape
    x = jnp.asarray(inp_img, jnp.float32).reshape(H * W, C)
    gamma = _embed_language(_trim_language(lang_goal), N_HIDDEN)
    h1 = jnp.maximum(x @ params['w1'] + params['b1'], 0.0)
    x1 = jnp.sum(h1 * params['v1'], axis=-1, keepdims=True)
    h2 = jnp.maximum((x @ params['w2'] + params['b2'] + h1) * gamma, 0.0)
    x2 = (jnp.sum(h2 * params['v2'], axis=-1, keepdims=True)
          * jnp.asarray(sim, jnp.float32).reshape(-1, 1))
    logits = (x1 + x2).reshape(1, H * W)
    if softmax:
        return jax.nn.softmax(logits, axis=-1).reshape(H, W, 1)
    return logits


# ------------------------------------ main ----------------------------------- #
if __name__ == "__main__":
    key = jax.random.PRNGKey(0)
    k_img, k_sim, k_par = jax.random.split(key, 3)

    H, W, C = 16, 16, 4
    inp_img = jax.random.uniform(k_img, (H, W, C), jnp.float32)
    sim = jax.random.uniform(k_sim, (H, W), jnp.float32)
    params = init_params(k_par, C, N_HIDDEN)
    lang_goal = "put the red block on the blue bowl"

    out = two_stream_atten_conceptfusion_forward(inp_img, lang_goal, sim, params,
                                                 softmax=True)
    out = jax.block_until_ready(out)
    assert out.shape == (H, W, 1), out.shape
    assert abs(float(jnp.sum(out)) - 1.0) < 1e-2, float(jnp.sum(out))

    raw = two_stream_atten_conceptfusion_forward(inp_img, lang_goal, sim, params,
                                                 softmax=False)
    raw = jax.block_until_ready(raw)
    assert raw.shape == (1, H * W), raw.shape

    # compare against a pure-JAX f32 reference (kernel uses bf16 MXU operands)
    ref_probs = _reference_forward(inp_img, lang_goal, sim, params, softmax=True)
    ref_logits = _reference_forward(inp_img, lang_goal, sim, params, softmax=False)
    assert float(jnp.max(jnp.abs(out - ref_probs))) < 1e-3
    assert float(jnp.max(jnp.abs(raw - ref_logits))) < 3e-2

    # multi-tile (forced small tile) exercises the parallel partial-stats combine
    out_mt = jax.block_until_ready(
        two_stream_atten_conceptfusion_forward(inp_img, lang_goal, sim, params,
                                               softmax=True, max_tile_px=128))
    assert float(jnp.max(jnp.abs(out_mt - ref_probs))) < 1e-3

    # ragged spatial size + multiple tiles exercises pixel-padding / -inf masking
    H2, W2 = 13, 11
    img2 = jax.random.uniform(jax.random.PRNGKey(1), (H2, W2, C), jnp.float32)
    sim2 = jax.random.uniform(jax.random.PRNGKey(2), (H2, W2), jnp.float32)
    out2 = jax.block_until_ready(
        two_stream_atten_conceptfusion_forward(img2, lang_goal, sim2, params,
                                               softmax=True, max_tile_px=128))
    assert out2.shape == (H2, W2, 1), out2.shape
    assert abs(float(jnp.sum(out2)) - 1.0) < 1e-2, float(jnp.sum(out2))
    ref2 = _reference_forward(img2, lang_goal, sim2, params, softmax=True)
    assert float(jnp.max(jnp.abs(out2 - ref2))) < 1e-3

    print("KERNEL_OK")
</pallas_src>

<mosaic_0001>
module attributes {stable_mosaic.version = 11 : i64} {
  func.func @kernel(%arg0: i32, %arg1: memref<16x256xbf16, #tpu.memory_space<vmem>>, %arg2: memref<1x256xf32, #tpu.memory_space<vmem>>, %arg3: memref<64x16xbf16, #tpu.memory_space<vmem>>, %arg4: memref<8x64xbf16, #tpu.memory_space<vmem>>, %arg5: memref<1x256xf32, #tpu.memory_space<vmem>>, %arg6: memref<1x128xf32, #tpu.memory_space<vmem>>, %arg7: memref<1x128xf32, #tpu.memory_space<vmem>>) attributes {dimension_semantics = [#tpu.dimension_semantics<parallel>], iteration_bounds = array<i64: 1>, scalar_prefetch = 0 : i64, scratch_operands = 0 : i64, tpu.core_type = #tpu.core_type<tc>, window_params = [{transform_indices = @transform_0, window_bounds = array<i64: 16, 256>}, {transform_indices = @transform_1, window_bounds = array<i64: 1, 256>}, {pipeline_mode = #tpu.pipeline_mode<synchronous>, transform_indices = @transform_2, window_bounds = array<i64: 64, 16>}, {pipeline_mode = #tpu.pipeline_mode<synchronous>, transform_indices = @transform_3, window_bounds = array<i64: 8, 64>}, {transform_indices = @transform_4, window_bounds = array<i64: 1, 256>}, {transform_indices = @transform_5, window_bounds = array<i64: 1, 128>}, {transform_indices = @transform_6, window_bounds = array<i64: 1, 128>}]} {
    %c0 = arith.constant 0 : index
    %c0_0 = arith.constant 0 : index
    %0 = vector.load %arg3[%c0, %c0_0] : memref<64x16xbf16, #tpu.memory_space<vmem>>, vector<64x16xbf16>
    %c0_1 = arith.constant 0 : index
    %c0_2 = arith.constant 0 : index
    %1 = vector.load %arg1[%c0_1, %c0_2] : memref<16x256xbf16, #tpu.memory_space<vmem>>, vector<16x256xbf16>
    %cst = arith.constant dense<0.000000e+00> : vector<64x256xf32>
    %2 = tpu.matmul %0, %1, %cst {dimension_numbers = #tpu.dot_dimension_numbers<[1], [0], [0], [1], [0, 0, 1, 1], [], []>} : vector<64x16xbf16>, vector<16x256xbf16>, vector<64x256xf32> -> vector<64x256xf32>
    %3 = vector.extract_strided_slice %2 {offsets = [0, 0], sizes = [32, 256], strides = [1, 1]} : vector<64x256xf32> to vector<32x256xf32>
    %cst_3 = arith.constant 0.000000e+00 : f32
    %4 = vector.broadcast %cst_3 : f32 to vector<32x256xf32>
    %5 = arith.maximumf %3, %4 : vector<32x256xf32>
    %6 = vector.extract_strided_slice %2 {offsets = [32, 0], sizes = [32, 256], strides = [1, 1]} : vector<64x256xf32> to vector<32x256xf32>
    %7 = arith.addf %6, %5 : vector<32x256xf32>
    %cst_4 = arith.constant 0.000000e+00 : f32
    %8 = vector.broadcast %cst_4 : f32 to vector<32x256xf32>
    %9 = arith.maximumf %7, %8 : vector<32x256xf32>
    %10 = tpu.concatenate %5, %9 in 0 : vector<32x256xf32>, vector<32x256xf32> -> vector<64x256xf32>
    %11 = arith.truncf %10 : vector<64x256xf32> to vector<64x256xbf16>
    %c0_5 = arith.constant 0 : index
    %c0_6 = arith.constant 0 : index
    %12 = vector.load %arg4[%c0_5, %c0_6] : memref<8x64xbf16, #tpu.memory_space<vmem>>, vector<8x64xbf16>
    %cst_7 = arith.constant dense<0.000000e+00> : vector<8x256xf32>
    %13 = tpu.matmul %12, %11, %cst_7 {dimension_numbers = #tpu.dot_dimension_numbers<[1], [0], [0], [1], [0, 0, 1, 1], [], []>} : vector<8x64xbf16>, vector<64x256xbf16>, vector<8x256xf32> -> vector<8x256xf32>
    %14 = vector.extract_strided_slice %13 {offsets = [0, 0], sizes = [1, 256], strides = [1, 1]} : vector<8x256xf32> to vector<1x256xf32>
    %15 = vector.extract_strided_slice %13 {offsets = [1, 0], sizes = [1, 256], strides = [1, 1]} : vector<8x256xf32> to vector<1x256xf32>
    %c0_8 = arith.constant 0 : index
    %c0_9 = arith.constant 0 : index
    %16 = vector.load %arg2[%c0_8, %c0_9] : memref<1x256xf32, #tpu.memory_space<vmem>>, vector<1x256xf32>
    %17 = arith.mulf %15, %16 : vector<1x256xf32>
    %18 = arith.addf %14, %17 : vector<1x256xf32>
    %c0_10 = arith.constant 0 : index
    %c0_11 = arith.constant 0 : index
    %19 = vector.load %arg5[%c0_10, %c0_11] : memref<1x256xf32, #tpu.memory_space<vmem>>, vector<1x256xf32>
    tpu.vector_store %arg5[%c0_10, %c0_11], %18 {strides = array<i32>} : memref<1x256xf32, #tpu.memory_space<vmem>>, vector<1x256xf32>,
    %cst_12 = arith.constant dense<0xFF800000> : vector<1xf32>
    %20 = vector.multi_reduction <maximumf>, %18, %cst_12 [1] : vector<1x256xf32> to vector<1xf32>
    %21 = vector.shape_cast %20 : vector<1xf32> to vector<1x1xf32>
    %22 = vector.broadcast %21 : vector<1x1xf32> to vector<1x256xf32>
    %23 = arith.subf %18, %22 : vector<1x256xf32>
    %24 = math.exp %23 : vector<1x256xf32>
    %cst_13 = arith.constant dense<0.000000e+00> : vector<1xf32>
    %25 = vector.multi_reduction <add>, %24, %cst_13 [1] : vector<1x256xf32> to vector<1xf32>
    %26 = vector.shape_cast %25 : vector<1xf32> to vector<1x1xf32>
    %27 = vector.shape_cast %21 : vector<1x1xf32> to vector<1x1xf32>
    %28 = vector.broadcast %27 : vector<1x1xf32> to vector<1x128xf32>
    %c0_14 = arith.constant 0 : index
    %c0_15 = arith.constant 0 : index
    %29 = vector.load %arg6[%c0_14, %c0_15] : memref<1x128xf32, #tpu.memory_space<vmem>>, vector<1x128xf32>
    tpu.vector_store %arg6[%c0_14, %c0_15], %28 {strides = array<i32>} : memref<1x128xf32, #tpu.memory_space<vmem>>, vector<1x128xf32>,
    %30 = vector.shape_cast %26 : vector<1x1xf32> to vector<1x1xf32>
    %31 = vector.broadcast %30 : vector<1x1xf32> to vector<1x128xf32>
    %c0_16 = arith.constant 0 : index
    %c0_17 = arith.constant 0 : index
    %32 = vector.load %arg7[%c0_16, %c0_17] : memref<1x128xf32, #tpu.memory_space<vmem>>, vector<1x128xf32>
    tpu.vector_store %arg7[%c0_16, %c0_17], %31 {strides = array<i32>} : memref<1x128xf32, #tpu.memory_space<vmem>>, vector<1x128xf32>,
    return
  }
  func.func @transform_0(%arg0: i32) -> (i32, i32) {
    %c0_i32 = arith.constant 0 : i32
    %c0_i32_0 = arith.constant 0 : i32
    return %c0_i32, %arg0 : i32, i32
  }
  func.func @transform_1(%arg0: i32) -> (i32, i32) {
    %c0_i32 = arith.constant 0 : i32
    %c0_i32_0 = arith.constant 0 : i32
    return %c0_i32, %arg0 : i32, i32
  }
  func.func @transform_2(%arg0: i32) -> (i32, i32) {
    %c0_i32 = arith.constant 0 : i32
    %c0_i32_0 = arith.constant 0 : i32
    %c0_i32_1 = arith.constant 0 : i32
    return %c0_i32, %c0_i32_0 : i32, i32
  }
  func.func @transform_3(%arg0: i32) -> (i32, i32) {
    %c0_i32 = arith.constant 0 : i32
    %c0_i32_0 = arith.constant 0 : i32
    %c0_i32_1 = arith.constant 0 : i32
    return %c0_i32, %c0_i32_0 : i32, i32
  }
  func.func @transform_4(%arg0: i32) -> (i32, i32) {
    %c0_i32 = arith.constant 0 : i32
    %c0_i32_0 = arith.constant 0 : i32
    return %c0_i32, %arg0 : i32, i32
  }
  func.func @transform_5(%arg0: i32) -> (i32, i32) {
    %c0_i32 = arith.constant 0 : i32
    %c0_i32_0 = arith.constant 0 : i32
    return %c0_i32, %arg0 : i32, i32
  }
  func.func @transform_6(%arg0: i32) -> (i32, i32) {
    %c0_i32 = arith.constant 0 : i32
    %c0_i32_0 = arith.constant 0 : i32
    return %c0_i32, %arg0 : i32, i32
  }
}

</mosaic_0001>

<bundles_post_ra>
// kernel: tpu_custom_call.1
= control target key start
LH: loop header
LB: loop body
LE: loop exit
PB: predicated region body
PF: predicated region fallthrough
CT: control target
= control target key end

     0   :  { %12 = vsyncpa [#allocation3], 0  ;;  %s496_s0 = inlined_call_operand.vmem [shape: bf16[16,256], index: 0, kind: input, shape index: {}]   ;;  %s497_s1 = inlined_call_operand.vmem [shape: f32[1,256], index: 1, kind: input, shape index: {}]   ;;  %s498_s2 = inlined_call_operand.vmem [shape: bf16[64,16], index: 2, kind: input, shape index: {}]   ;;  %s499_s3 = inlined_call_operand.vmem [shape: bf16[8,64], index: 3, kind: input, shape index: {}]   ;;  %s500_s4 = inlined_call_operand.hbm [shape: f32[1,256], index: 4, kind: output, shape index: {0}]   ;;  %s501_s5 = inlined_call_operand.hbm [shape: f32[1,128], index: 5, kind: output, shape index: {1}]   ;;  %s502_s6 = inlined_call_operand.hbm [shape: f32[1,128], index: 6, kind: output, shape index: {2}]  }
   0x1   :  { %v307_v0 = vld [vmem:[%s496_s0] sm:$0xf]  ;;  %v328_v1 = vld [vmem:[%s496_s0 + $0x4] sm:$0xf0]  ;;  %v327_v2 = vld [vmem:[%s496_s0 + $0x4] sm:$0xf] }
   0x2   :  { %v308_v3 = vor.u32 %v328_v1, %v307_v0  ;;  %v309_v4 = vld [vmem:[%s496_s0 + $0x8] sm:$0xf0]  ;;  %v323_v6 = vld [vmem:[%s498_s2] sm:$0xff]  ;;  %v326_v7 = vld [vmem:[%s498_s2 + $0x18] sm:$0xff] }
   0x3   :  { %v312_v5 = vor.u32 %v327_v2, %v309_v4 }
   0x4   :  { %13 = vsyncpa [#allocation5], 0  ;;  %83 = vmatpush.bf16.msra.mxu0 %v308_v3  ;;  %vm63_vm0 = vcmask 130048   ;;  %329 = vmatpush.bf16.msra.mxu2 %v308_v3  ;;  %v324_v8 = vld [vmem:[%s498_s2 + $0x8] sm:$0xff]  ;;  %v325_v9 = vld [vmem:[%s498_s2 + $0x10] sm:$0xff]  ;;  %vm167_vm1 = vcmask 523264   ;;  %v219_v4 = vlaneseq }
   0x5   :  { %112 = vmatpush.bf16.msra.mxu1 %v312_v5  ;;  %330 = vmatpush.bf16.msra.mxu3 %v312_v5  ;;  %v166_v58 = vld [vmem:[%s499_s3] sm:$0xf]  ;;  %vm216_vm2 = vcmask 1040384   ;;  %s260_s17 = sshll.u32 %s501_s5, 4  ;;  %s249_s20 = sshll.u32 %s500_s4, 4  ;;  %s261_s17 = int_to_ptr.hbm [resolvable:$true] %s260_s17  ;;  %s250_s20 = int_to_ptr.hbm [resolvable:$true] %s249_s20 }
   0x6   :  { %v197_v59 = vld [vmem:[%s497_s1] sm:$0x3]  ;;  %vm221_vm3 = vcmp.lt.s32.totalorder %v219_v4, 256  ;;  %s414_s1 = smov [#allocation4]   ;;  %s415_s21 = smov [#allocation2]  }
   0x7   :  { %313 = vmatmul.msk.bf16.vlgmr.msra.gmra.mxu0 %vm63_vm0, %v323_v6  ;;  %316 = vmatmul.msk.bf16.vlgmr.msra.gmra.mxu2 %vm63_vm0, %v326_v7  ;;  %v199_v60 = vperm.slane %v197_v59, 0  ;;  %v200_v61 = vperm.slane %v197_v59, 1  ;;  %s258_s3 = sshll.u32 %s414_s1, 4  ;;  %s247_s22 = sshll.u32 %s415_s21, 4  ;;  %s259_s3 = int_to_ptr.vmem [resolvable:$true] %s258_s3  ;;  %s248_s22 = int_to_ptr.vmem [resolvable:$true] %s247_s22 }
   0x8   :  { %317 = vmatmul.msk.bf16.vlgmr.msra.gmra.mxu1 %vm63_vm0, %v323_v6  ;;  %320 = vmatmul.msk.bf16.vlgmr.msra.gmra.mxu3 %vm63_vm0, %v326_v7  ;;  %s416_s5 = smov [#allocation6]   ;;  %s271_s4 = sshll.u32 %s502_s6, 4  ;;  %s272_s4 = int_to_ptr.hbm [resolvable:$true] %s271_s4 }
   0x9   :  { %s269_s23 = sshll.u32 %s416_s5, 4  ;;  %s270_s23 = int_to_ptr.vmem [resolvable:$true] %s269_s23 }
  0x17   :  { %314 = vmatmul.msk.bf16.gmra.mxu0 %vm63_vm0, %v324_v8 }
  0x18   :  { %318 = vmatmul.msk.bf16.gmra.mxu1 %vm63_vm0, %v324_v8 }
  0x27   :  { %315 = vmatmul.msk.bf16.gmra.mxu0 %vm63_vm0, %v325_v9 }
  0x28   :  { %319 = vmatmul.msk.bf16.gmra.mxu1 %vm63_vm0, %v325_v9 }
  0x84   :  { %v85_v10 = vpop.f32.mrf.mxu0 }
  0x85   :  { %v114_v11 = vpop.f32.mrf.mxu1  ;;  %v134_v38 = vmax.f32 %v85_v10, 0.0 }
  0x86   :  { %v135_v39 = vmax.f32 %v114_v11, 0.0 }
  0x8a   :  { %v100_v14 = vpop.f32.mrf.mxu2 }
  0x8b   :  { %v129_v15 = vpop.f32.mrf.mxu3 }
  0x8c   :  { %v87_v12 = vpop.f32.mrf.mxu0 }
  0x8d   :  { %v116_v13 = vpop.f32.mrf.mxu1  ;;  %v136_v40 = vmax.f32 %v87_v12, 0.0 }
  0x8e   :  { %v137_v42 = vmax.f32 %v116_v13, 0.0 }
  0x8f   :  { %v158_v56 = vpack.c.bf16 %v136_v40, %v134_v38 }
  0x90   :  { %v159_v57 = vpack.c.bf16 %v137_v42, %v135_v39 }
  0x92   :  { %v102_v21 = vpop.f32.mrf.mxu2 }
  0x93   :  { %v131_v25 = vpop.f32.mrf.mxu3 }
  0x94   :  { %v90_v16 = vpop.f32.mrf.mxu0 }
  0x95   :  { %v119_v17 = vpop.f32.mrf.mxu1  ;;  %v138_v18 = vmax.f32 %v90_v16, 0.0 }
  0x96   :  { %v139_v19 = vmax.f32 %v119_v17, 0.0 }
  0x97   :  { %v146_v22 = vadd.f32 %v138_v18, %v100_v14 }
  0x98   :  { %v147_v26 = vadd.f32 %v139_v19, %v129_v15 }
  0x99   :  { %v154_v30 = vmax.f32 %v146_v22, 0.0 }
  0x9a   :  { %v155_v32 = vmax.f32 %v147_v26, 0.0 }
  0x9c   :  { %v92_v20 = vpop.f32.mrf.mxu0 }
  0x9d   :  { %v140_v23 = vmax.f32 %v92_v20, 0.0  ;;  %v121_v24 = vpop.f32.mrf.mxu1 }
  0x9e   :  { %v141_v27 = vmax.f32 %v121_v24, 0.0 }
  0x9f   :  { %v148_v28 = vadd.f32 %v140_v23, %v102_v21  ;;  %v160_v54 = vpack.c.bf16 %v140_v23, %v138_v18 }
  0xa0   :  { %v149_v29 = vadd.f32 %v141_v27, %v131_v25  ;;  %v161_v55 = vpack.c.bf16 %v141_v27, %v139_v19 }
  0xa1   :  { %v156_v31 = vmax.f32 %v148_v28, 0.0 }
  0xa2   :  { %v157_v33 = vmax.f32 %v149_v29, 0.0 }
  0xa3   :  { %v164_v34 = vpack.c.bf16 %v156_v31, %v154_v30 }
  0xa4   :  { %v95_v35 = vpop.f32.mrf.mxu0  ;;  %v165_v36 = vpack.c.bf16 %v157_v33, %v155_v32 }
  0xa5   :  { %v124_v37 = vpop.f32.mrf.mxu1  ;;  %175 = vmatpush.bf16.msrb.mxu2 %v164_v34  ;;  %v142_v41 = vadd.f32 %v134_v38, %v95_v35 }
  0xa6   :  { %188 = vmatpush.bf16.msrb.mxu3 %v165_v36  ;;  %v143_v43 = vadd.f32 %v135_v39, %v124_v37 }
  0xa7   :  { %v150_v48 = vmax.f32 %v142_v41, 0.0 }
  0xa8   :  { %v151_v50 = vmax.f32 %v143_v43, 0.0 }
  0xac   :  { %v97_v44 = vpop.f32.mrf.mxu0 }
  0xad   :  { %v144_v45 = vadd.f32 %v136_v40, %v97_v44  ;;  %v126_v46 = vpop.f32.mrf.mxu1 }
  0xae   :  { %v145_v47 = vadd.f32 %v137_v42, %v126_v46 }
  0xaf   :  { %v152_v49 = vmax.f32 %v144_v45, 0.0 }
  0xb0   :  { %v153_v51 = vmax.f32 %v145_v47, 0.0 }
  0xb1   :  { %v162_v52 = vpack.c.bf16 %v152_v49, %v150_v48 }
  0xb2   :  { %v163_v53 = vpack.c.bf16 %v153_v51, %v151_v50 }
  0xb3   :  { %176 = vmatpush.bf16.msrb.mxu2 %v162_v52 }
  0xb4   :  { %189 = vmatpush.bf16.msrb.mxu3 %v163_v53 }
  0xb7   :  { %177 = vmatpush.bf16.msrb.mxu2 %v160_v54 }
  0xb8   :  { %190 = vmatpush.bf16.msrb.mxu3 %v161_v55 }
  0xbb   :  { %178 = vmatpush.bf16.msrb.mxu2 %v158_v56 }
  0xbc   :  { %191 = vmatpush.bf16.msrb.mxu3 %v159_v57 }
  0xbe   :  { %321 = vmatmul.msk.bf16.vlgmr.msrb.gmra.mxu2 %vm167_vm1, %v166_v58 }
  0xbf   :  { %322 = vmatmul.msk.bf16.vlgmr.msrb.gmra.mxu3 %vm167_vm1, %v166_v58 }
 0x141   :  { %v180_v62 = vpop.f32.mrf.mxu2 }
 0x142   :  { %v203_v63 = vmul.f32 %v199_v60, %v180_v62  ;;  %v193_v0 = vpop.f32.mrf.mxu3 }
 0x143   :  { %v204_v1 = vmul.f32 %v200_v61, %v193_v0 }
 0x144   :  { %v207_v2 = vrot.slane %v203_v63, 1 }
 0x145   :  { %v208_v3 = vrot.slane %v204_v1, 1 }
 0x146   :  { %v211_v5 = vadd.f32 %v207_v2, %v180_v62 }
 0x147   :  { %v212_v6 = vadd.f32 %v208_v3, %v193_v0 }
 0x148   :  { %v224_v7 = vsel %vm216_vm2, %v211_v5, -inf }
 0x149   :  { %v215_v8 = vrot.slane %v212_v6, 7  ;;  %v182_v9 = vpop.f32.mrf.mxu2  ;;  %v225_v10 = vsel %vm216_vm2, %v212_v6, -inf }
 0x14a   :  { %v195_v11 = vpop.f32.mrf.mxu3  ;;  %v226_v12 = vmax.f32 %v224_v7, %v225_v10 }
 0x14b   :  { %v217_v13 = vsel %vm216_vm2, %v211_v5, %v215_v8 }
 0x14c   :  { %227 = vmax.xlane.f32.xlu0 %v226_v12  ;;  %223 = vst.msk [vmem:[#allocation2] sm:$0x3] %vm221_vm3, %v217_v13 }
 0x14d   :  { %252 = dma.vmem_to_hbm [thread:$0]  %s248_s22, 32, %s250_s20, [#allocation3]  }
 0x1bf   :  { %v228_v14 = vpop.xlane.xlu0 %227 }
 0x1c0   :  { %v229_v15 = vsub.f32 %v211_v5, %v228_v14  ;;  %v230_v16 = vsub.f32 %v212_v6, %v228_v14  ;;  %240 = vst [vmem:[#allocation4] sm:$0x1] %v228_v14 }
 0x1c1   :  { %263 = dma.vmem_to_hbm [thread:$0]  %s259_s3, 16, %s261_s17, [#allocation5]  }
 0x1c2   :  { %v231_v17 = vmul.f32 1.442695, %v229_v15  ;;  %v233_v18 = vmul.f32 1.442695, %v230_v16 }
 0x1c4   :  { %334 = vpow2.f32 %v231_v17 }
 0x1c5   :  { %336 = vpow2.f32 %v233_v18 }
 0x1ca   :  { %v335_v19 = vpop.eup %334 }
 0x1cb   :  { %v337_v20 = vpop.eup %336  ;;  %v235_v21 = vsel %vm216_vm2, %v335_v19, 0.0 }
 0x1cc   :  { %v236_v22 = vsel %vm216_vm2, %v337_v20, 0.0 }
 0x1cd   :  { %v237_v23 = vadd.f32 %v236_v22, %v235_v21 }
 0x1cf   :  { %238 = vadd.xlane.f32.xlu0 %v237_v23 }
 0x242   :  { %v239_v24 = vpop.xlane.xlu0 %238 }
 0x243   :  { %241 = vst [vmem:[#allocation6] sm:$0x1] %v239_v24 }
 0x244   :  { %274 = dma.vmem_to_hbm [thread:$0]  %s270_s23, 16, %s272_s4, [#allocation5]  }
 0x245   :  { %410 = dma.done.wait [#allocation3], 32  }
 0x246   :  { %411 = vsyncadd [#allocation3], 4294967264 }
 0x247   :  { %412 = dma.done.wait [#allocation5], 32  }
 0x248   :  { %413 = vsyncadd [#allocation5], 4294967264 }
 0x249   :  { %287 = vsyncpa [#allocation3], 1 }
 0x24a   :  { %288 = vsyncpa [#allocation5], 1 }

</bundles_post_ra>
